<compile_context>
chip_gen: v5e
topology: v5e:2x2
jax: 0.10.0
libtpu: 0.0.40
codegen_flags: <defaults>
</compile_context>

<pallas_src>
import jax
import jax.numpy as jnp
from jax.experimental import pallas as pl
from jax.experimental.pallas import tpu as pltpu


def _round_up(x, m):
    return ((x + m - 1) // m) * m


def _tpu_caps():
    """Generation-aware VMEM budget and per-step DMA target for W_last tiles."""
    try:
        kind = jax.devices()[0].device_kind.lower()
    except Exception:  # pragma: no cover - no device available
        kind = ""
    if "v7" in kind or "7x" in kind:
        # v7x: 64 MiB physical VMEM per TC -> leave headroom; bigger DMA per
        # step because HBM is ~3.2 TB/s (fixed per-step overhead hurts more).
        return dict(vmem_budget=48 << 20, target_tile_bytes=8 << 20)
    if "v5" in kind or "v6" in kind:
        # v5e/v6e: 128 MiB physical VMEM -> allow large tiles.
        return dict(vmem_budget=96 << 20, target_tile_bytes=4 << 20)
    # Unknown chip: be conservative (assume small VMEM like v7x).
    return dict(vmem_budget=48 << 20, target_tile_bytes=4 << 20)


# ---------------------------------------------------------------------------
# Pallas kernels
# ---------------------------------------------------------------------------
def _make_hidden_kernel(num_hidden):
    """One-shot prologue: [Linear -> ReLU]*num_hidden, all f32, all in VMEM.

    refs = (x, w0, b0, ..., w_{H-1}, b_{H-1}, h_out).  Output is cast to the
    compute dtype (bf16) only at the store, since it feeds the MXU next.
    """

    def kernel(*refs):
        x_ref = refs[0]
        out_ref = refs[-1]
        h = x_ref[...]                                    # (batch_pad, latent_dim) f32
        for layer in range(num_hidden):
            w = refs[1 + 2 * layer][...]                  # (in, out) f32
            b = refs[2 + 2 * layer][...]                  # (1, out)  f32
            h = jnp.dot(h, w, preferred_element_type=jnp.float32) + b
            h = jnp.maximum(h, 0.0)                       # non_linearity = ReLU
        out_ref[...] = h.astype(out_ref.dtype)

    return kernel


def _last_layer_kernel(h_ref, w_ref, b_ref, out_ref):
    """Streamed final Linear: one MXU matmul per (hidden, TILE_N) weight tile."""
    res = jnp.dot(h_ref[...], w_ref[...], preferred_element_type=jnp.float32)
    res = res + b_ref[...]
    # h is sublane-padded for the MXU; drop the padded batch rows at the store
    # so the HBM write is only (batch, TILE_N).
    out_ref[...] = res[: out_ref.shape[0]].astype(out_ref.dtype)


# ---------------------------------------------------------------------------
# One-time parameter preparation (transpose / cast / pad at init, not per call)
# ---------------------------------------------------------------------------
def prepare_hypernet_mlp_params(params, output_dim, tile_n=None,
                                compute_dtype=jnp.bfloat16, max_batch=64):
    """params: list of (weight (out,in), bias (out,)) in torch.nn.Linear layout.

    Hidden layers stay f32 (tiny, never the bandwidth bottleneck); only the
    streamed last-layer weight is cast to `compute_dtype`.  `max_batch` is
    only used to keep the VMEM-based tile clamp conservative.
    """
    hidden = []
    for w, b in params[:-1]:
        hidden.append((jnp.asarray(w, jnp.float32).T,                 # (in, out) f32
                       jnp.asarray(b, jnp.float32).reshape(1, -1)))   # (1, out)  f32

    w_last, b_last = params[-1]
    hidden_dim = w_last.shape[1]
    w_itemsize = jnp.dtype(compute_dtype).itemsize
    caps = _tpu_caps()

    padded_n128 = _round_up(output_dim, 128)

    if tile_n is None:
        # (1) Lanes needed to hit the per-step DMA-amortization target.
        target_lanes = max(128, caps["target_tile_bytes"] // (hidden_dim * w_itemsize))
        # (2) Lanes allowed by the double-buffered VMEM budget.
        batch_pad = _round_up(max_batch, 8)
        hidden_pad = _round_up(hidden_dim, 16 if w_itemsize == 2 else 8)
        per_lane = 2 * (hidden_pad * w_itemsize      # W_last tile (x2 buffers)
                        + 8 * 4                      # bias tile (sublane padded)
                        + batch_pad * 4)             # output tile (f32)
        resident = batch_pad * _round_up(hidden_dim, 128) * w_itemsize
        vmem_lanes = max(128, (caps["vmem_budget"] - resident - (4 << 20)) // per_lane)
        tile_cap = max(128, (min(target_lanes, vmem_lanes, padded_n128) // 128) * 128)
        # (3) Among multiples of 128 in [tile_cap/2, tile_cap], minimise the
        #     zero-padding waste of round_up(padded_n128, tile); ties -> bigger.
        best_key, best_tile = None, tile_cap
        lo = max(128, ((tile_cap // 2) // 128) * 128)
        for cand in range(lo, tile_cap + 1, 128):
            waste = _round_up(padded_n128, cand) - padded_n128
            key = (waste, -cand)
            if best_key is None or key < best_key:
                best_key, best_tile = key, cand
        tile_n = best_tile
    else:
        tile_n = max(128, _round_up(tile_n, 128))

    padded_n = _round_up(padded_n128, tile_n)

    w_last_t = jnp.zeros((hidden_dim, padded_n), compute_dtype)
    w_last_t = w_last_t.at[:, :output_dim].set(
        jnp.asarray(w_last, jnp.float32).T.astype(compute_dtype))
    b_last_2d = jnp.zeros((1, padded_n), jnp.float32)
    b_last_2d = b_last_2d.at[:, :output_dim].set(
        jnp.asarray(b_last, jnp.float32).reshape(1, -1))

    return dict(hidden=hidden, w_last=w_last_t, b_last=b_last_2d,
                tile_n=tile_n, padded_n=padded_n, output_dim=output_dim,
                compute_dtype=compute_dtype, caps=caps)


# ---------------------------------------------------------------------------
# Pallas-backed MLP forward
# ---------------------------------------------------------------------------
def hypernetwork_mlp_forward(latents, kernel_params):
    hidden = kernel_params["hidden"]
    w_last = kernel_params["w_last"]          # (hidden_dim, padded_n) bf16
    b_last = kernel_params["b_last"]          # (1, padded_n) f32
    tile_n = kernel_params["tile_n"]
    padded_n = kernel_params["padded_n"]
    output_dim = kernel_params["output_dim"]
    compute_dtype = kernel_params["compute_dtype"]
    caps = kernel_params["caps"]

    batch, latent_dim = latents.shape
    hidden_dim = w_last.shape[0]
    num_hidden = len(hidden)
    w_itemsize = jnp.dtype(compute_dtype).itemsize

    # Sublane-pad the batch only for the MXU operands (never written to HBM).
    batch_pad = _round_up(max(batch, 8), 8)
    x = jnp.zeros((batch_pad, latent_dim), jnp.float32)
    x = x.at[:batch].set(latents.astype(jnp.float32))

    # ---- Prologue: hidden stack, computed ONCE (f32, tiny, fully in VMEM) ----
    if num_hidden:
        args = [x]
        for w_t, b2d in hidden:
            args += [w_t, b2d]
        h = pl.pallas_call(
            _make_hidden_kernel(num_hidden),
            out_shape=jax.ShapeDtypeStruct((batch_pad, hidden_dim), compute_dtype),
        )(*args)
    else:
        h = x.astype(compute_dtype)

    # ---- Main kernel: stream W_last lane-dense over the output dimension ----
    grid_n = padded_n // tile_n
    hidden_pad = _round_up(hidden_dim, 16 if w_itemsize == 2 else 8)
    per_tile = tile_n * (hidden_pad * w_itemsize + 8 * 4 + batch_pad * 4)
    resident = batch_pad * _round_up(hidden_dim, 128) * w_itemsize
    vmem_limit = int(min(caps["vmem_budget"],
                         max(16 << 20, 2 * per_tile + resident + (4 << 20))))

    flops = 2 * batch_pad * hidden_dim * padded_n
    bytes_accessed = int(h.size * w_itemsize + w_last.size * w_itemsize
                         + b_last.size * 4 + batch * padded_n * 4)

    out = pl.pallas_call(
        _last_layer_kernel,
        out_shape=jax.ShapeDtypeStruct((batch, padded_n), jnp.float32),
        grid=(grid_n,),
        in_specs=[
            # h: constant block -> fetched once, VMEM-resident across the grid.
            pl.BlockSpec((batch_pad, hidden_dim), lambda j: (0, 0)),
            # streamed, double-buffered W_last / bias tiles (lane-dense).
            pl.BlockSpec((hidden_dim, tile_n), lambda j: (0, j)),
            pl.BlockSpec((1, tile_n), lambda j: (0, j)),
        ],
        # batch == full dim keeps the spec legal without writing padded rows.
        out_specs=pl.BlockSpec((batch, tile_n), lambda j: (0, j)),
        compiler_params=pltpu.CompilerParams(
            # Every grid step is independent. On v7x, if a profile shows one
            # TensorCore idle, switch this axis to pltpu.CORE_PARALLEL.
            dimension_semantics=("parallel",),
            vmem_limit_bytes=vmem_limit),
        cost_estimate=pl.CostEstimate(flops=flops, transcendentals=0,
                                      bytes_accessed=bytes_accessed),
    )(h, w_last, b_last)
    return out[:, :output_dim]


# ---------------------------------------------------------------------------
# HyperNetwork (JAX/Pallas port)
# ---------------------------------------------------------------------------
class HyperNetworkPallas:
    """JAX/Pallas port of models.function_distribution.HyperNetwork."""

    def __init__(self, weight_shapes, bias_shapes, latent_dim, layer_sizes, key,
                 tile_n=None, compute_dtype=jnp.bfloat16, max_batch=64):
        # --- _infer_output_shapes -----------------------------------------
        self.weight_shapes = weight_shapes
        self.bias_shapes = bias_shapes
        num_layers = len(weight_shapes)
        self.output_dim = 0
        for i in range(num_layers):
            self.output_dim += weight_shapes[i][0] * weight_shapes[i][1]
            self.output_dim += bias_shapes[i][0]
        start_index = 0
        self.weight_partition = []
        for i in range(num_layers):
            ws = weight_shapes[i][0] * weight_shapes[i][1]
            self.weight_partition.append((start_index, start_index + ws))
            start_index += ws
        self.bias_partition = []
        for i in range(num_layers):
            bs = bias_shapes[i][0]
            self.bias_partition.append((start_index, start_index + bs))
            start_index += bs
        self.num_layers_function_representation = num_layers
        self.latent_dim = latent_dim
        self.layer_sizes = layer_sizes

        # --- _init_neural_net (deterministic PyTorch-Linear-style init) ----
        self.params = []
        prev = latent_dim
        for num_units in list(layer_sizes) + [self.output_dim]:
            key, kw, kb = jax.random.split(key, 3)
            bound = 1.0 / float(prev) ** 0.5
            w = jax.random.uniform(kw, (num_units, prev), jnp.float32, -bound, bound)
            b = jax.random.uniform(kb, (num_units,), jnp.float32, -bound, bound)
            self.params.append((w, b))
            prev = num_units

        # Kernel-layout params (pre-transposed / padded / W_last cast) built once.
        self.kernel_params = prepare_hypernet_mlp_params(
            self.params, self.output_dim, tile_n=tile_n,
            compute_dtype=compute_dtype, max_batch=max_batch)

    def mlp_forward(self, latents):
        return hypernetwork_mlp_forward(latents, self.kernel_params)

    def output_to_weights(self, output):
        """Split (batch, output_dim) into per-sample weight/bias lists.

        Vectorized over the batch (one slice + reshape per parameter tensor);
        the per-sample dict structure of the original module is preserved.
        """
        batch = output.shape[0]
        batched_w = [output[:, s:e].reshape(batch, *self.weight_shapes[j])
                     for j, (s, e) in enumerate(self.weight_partition)]
        batched_b = [output[:, s:e].reshape(batch, *self.bias_shapes[j])
                     for j, (s, e) in enumerate(self.bias_partition)]
        all_weights = {i: [w[i] for w in batched_w] for i in range(batch)}
        all_biases = {i: [b[i] for b in batched_b] for i in range(batch)}
        return all_weights, all_biases

    def forward(self, latents):
        return self.output_to_weights(self.mlp_forward(latents))


# ---------------------------------------------------------------------------
# Pure-JAX references for the silent correctness checks
# ---------------------------------------------------------------------------
def _mlp_reference_matched(latents, params, compute_dtype=jnp.bfloat16):
    """Mirrors kernel numerics: f32 hidden stack, bf16 h / W_last, f32 accum."""
    h = latents.astype(jnp.float32)
    for w, b in params[:-1]:
        h = jnp.dot(h, jnp.asarray(w, jnp.float32).T,
                    precision=jax.lax.Precision.HIGHEST) + jnp.asarray(b, jnp.float32)
        h = jnp.maximum(h, 0.0)
    w_last, b_last = params[-1]
    hq = h.astype(compute_dtype).astype(jnp.float32)
    wq = jnp.asarray(w_last, jnp.float32).T.astype(compute_dtype).astype(jnp.float32)
    return (jnp.dot(hq, wq, precision=jax.lax.Precision.HIGHEST)
            + jnp.asarray(b_last, jnp.float32))


def _mlp_reference_f32(latents, params):
    h = latents
    for idx, (w, b) in enumerate(params):
        h = jnp.dot(h, w.T, precision=jax.lax.Precision.HIGHEST) + b
        if idx < len(params) - 1:
            h = jnp.maximum(h, 0.0)
    return h


if __name__ == "__main__":
    key = jax.random.PRNGKey(0)

    # Synthetic function-representation shapes (coordinate MLP 2 -> 16 -> 16 -> 3),
    # as would be returned by function_representation.get_weight_shapes().
    weight_shapes = [(16, 2), (16, 16), (3, 16)]
    bias_shapes = [(16,), (16,), (3,)]

    latent_dim = 32
    layer_sizes = (64, 64)
    batch_size = 2

    key, init_key, lat_key = jax.random.split(key, 3)
    # tile_n=128: output_dim=371 pads to 384 -> 3 streamed weight tiles, which
    # exercises the pipelined/tiled path even at these toy sizes.
    hypernet = HyperNetworkPallas(weight_shapes, bias_shapes, latent_dim,
                                  layer_sizes, init_key, tile_n=128)

    latents = jax.random.normal(lat_key, (batch_size, latent_dim), jnp.float32)

    # Pallas-backed MLP forward (multi-tile path).
    out = jax.block_until_ready(hypernet.mlp_forward(latents))
    assert out.shape == (batch_size, hypernet.output_dim)

    # Auto tile-sizing path (single full-width tile at these toy sizes).
    kp_auto = prepare_hypernet_mlp_params(hypernet.params, hypernet.output_dim)
    out_auto = jax.block_until_ready(hypernetwork_mlp_forward(latents, kp_auto))
    assert float(jnp.max(jnp.abs(out_auto - out))) < 1e-4

    # Silent sanity checks: numerics-matched reference and full-f32 semantics.
    ref_matched = _mlp_reference_matched(latents, hypernet.params)
    assert float(jnp.max(jnp.abs(out - ref_matched))) < 2e-2
    ref_f32 = _mlp_reference_f32(latents, hypernet.params)
    assert float(jnp.max(jnp.abs(out - ref_f32))) < 5e-2

    # Full module output: dicts of per-sample weights/biases.
    all_weights, all_biases = hypernet.forward(latents)
    jax.block_until_ready(all_weights[0][0])
    assert len(all_weights) == batch_size
    assert all_weights[0][0].shape == weight_shapes[0]
    assert all_biases[1][-1].shape == bias_shapes[-1]

    print("KERNEL_OK")
</pallas_src>

<mosaic_0001>
module attributes {stable_mosaic.version = 11 : i64} {
  func.func @kernel(%arg0: memref<8x32xf32, #tpu.memory_space<vmem>>, %arg1: memref<32x64xf32, #tpu.memory_space<vmem>>, %arg2: memref<1x64xf32, #tpu.memory_space<vmem>>, %arg3: memref<64x64xf32, #tpu.memory_space<vmem>>, %arg4: memref<1x64xf32, #tpu.memory_space<vmem>>, %arg5: memref<8x64xbf16, #tpu.memory_space<vmem>>) attributes {dimension_semantics = [], scalar_prefetch = 0 : i64, scratch_operands = 0 : i64, tpu.core_type = #tpu.core_type<tc>} {
    %c0 = arith.constant 0 : index
    %c0_0 = arith.constant 0 : index
    %0 = vector.load %arg0[%c0, %c0_0] : memref<8x32xf32, #tpu.memory_space<vmem>>, vector<8x32xf32>
    %c0_1 = arith.constant 0 : index
    %c0_2 = arith.constant 0 : index
    %1 = vector.load %arg1[%c0_1, %c0_2] : memref<32x64xf32, #tpu.memory_space<vmem>>, vector<32x64xf32>
    %c0_3 = arith.constant 0 : index
    %c0_4 = arith.constant 0 : index
    %2 = vector.load %arg2[%c0_3, %c0_4] : memref<1x64xf32, #tpu.memory_space<vmem>>, vector<1x64xf32>
    %cst = arith.constant dense<0.000000e+00> : vector<8x64xf32>
    %3 = tpu.matmul %0, %1, %cst {dimension_numbers = #tpu.dot_dimension_numbers<[1], [0], [0], [1], [0, 0, 1, 1], [], []>} : vector<8x32xf32>, vector<32x64xf32>, vector<8x64xf32> -> vector<8x64xf32>
    %4 = vector.broadcast %2 : vector<1x64xf32> to vector<8x64xf32>
    %5 = arith.addf %3, %4 : vector<8x64xf32>
    %cst_5 = arith.constant 0.000000e+00 : f32
    %6 = vector.broadcast %cst_5 : f32 to vector<8x64xf32>
    %7 = arith.maximumf %5, %6 : vector<8x64xf32>
    %c0_6 = arith.constant 0 : index
    %c0_7 = arith.constant 0 : index
    %8 = vector.load %arg3[%c0_6, %c0_7] : memref<64x64xf32, #tpu.memory_space<vmem>>, vector<64x64xf32>
    %c0_8 = arith.constant 0 : index
    %c0_9 = arith.constant 0 : index
    %9 = vector.load %arg4[%c0_8, %c0_9] : memref<1x64xf32, #tpu.memory_space<vmem>>, vector<1x64xf32>
    %cst_10 = arith.constant dense<0.000000e+00> : vector<8x64xf32>
    %10 = tpu.matmul %7, %8, %cst_10 {dimension_numbers = #tpu.dot_dimension_numbers<[1], [0], [0], [1], [0, 0, 1, 1], [], []>} : vector<8x64xf32>, vector<64x64xf32>, vector<8x64xf32> -> vector<8x64xf32>
    %11 = vector.broadcast %9 : vector<1x64xf32> to vector<8x64xf32>
    %12 = arith.addf %10, %11 : vector<8x64xf32>
    %cst_11 = arith.constant 0.000000e+00 : f32
    %13 = vector.broadcast %cst_11 : f32 to vector<8x64xf32>
    %14 = arith.maximumf %12, %13 : vector<8x64xf32>
    %15 = arith.truncf %14 : vector<8x64xf32> to vector<8x64xbf16>
    %c0_12 = arith.constant 0 : index
    %c0_13 = arith.constant 0 : index
    %16 = vector.load %arg5[%c0_12, %c0_13] : memref<8x64xbf16, #tpu.memory_space<vmem>>, vector<8x64xbf16>
    tpu.vector_store %arg5[%c0_12, %c0_13], %15 {strides = array<i32>} : memref<8x64xbf16, #tpu.memory_space<vmem>>, vector<8x64xbf16>,
    return
  }
}

</mosaic_0001>

<bundles_post_ra>
// kernel: tpu_custom_call.1
= control target key start
LH: loop header
LB: loop body
LE: loop exit
PB: predicated region body
PF: predicated region fallthrough
CT: control target
= control target key end

     0   :  { %10 = vsyncpa [#allocation3], 0  ;;  %s324_s0 = inlined_call_operand.hbm [shape: f32[8,32], index: 0, kind: input, shape index: {}]   ;;  %s325_s1 = inlined_call_operand.hbm [shape: f32[32,64], index: 1, kind: input, shape index: {}]   ;;  %s326_s2 = inlined_call_operand.vmem [shape: f32[1,64], index: 2, kind: input, shape index: {}]   ;;  %s327_s3 = inlined_call_operand.hbm [shape: f32[64,64], index: 3, kind: input, shape index: {}]   ;;  %s328_s4 = inlined_call_operand.vmem [shape: f32[1,64], index: 4, kind: input, shape index: {}]   ;;  %s329_s5 = inlined_call_operand.hbm [shape: bf16[8,64], index: 5, kind: output, shape index: {}]  }
   0x1   :  { %11 = vsyncpa [#allocation6], 0  ;;  %s28_s20 = sshll.u32 %s325_s1, 4  ;;  %s29_s20 = int_to_ptr.hbm [resolvable:$true] %s28_s20 }
   0x2   :  { %12 = vsyncpa [#allocation4], 0  ;;  %s270_s21 = smov [#allocation5]   ;;  %s18_s25 = sshll.u32 %s324_s0, 4  ;;  %s19_s25 = int_to_ptr.hbm [resolvable:$true] %s18_s25 }
   0x3   :  { %s30_s22 = sshll.u32 %s270_s21, 4  ;;  %s271_s26 = smov 128   ;;  %s31_s22 = int_to_ptr.vmem [resolvable:$true] %s30_s22 }
   0x4   :  { %s272_s27 = smov 8   ;;  %s273_s28 = smov [#allocation2]  }
   0x5   :  { %36 = dma.hbm_to_vmem [thread:$0]  %s29_s20, 512, %s31_s22, [#allocation6], %s271_s26, %s271_s26, %s272_s27  }
   0x6   :  { %s20_s29 = sshll.u32 %s273_s28, 4  ;;  %s43_s7 = sshll.u32 %s327_s3, 4  ;;  %s21_s29 = int_to_ptr.vmem [resolvable:$true] %s20_s29  ;;  %s44_s7 = int_to_ptr.hbm [resolvable:$true] %s43_s7 }
   0x7   :  { %23 = dma.hbm_to_vmem [thread:$0]  %s19_s25, 128, %s21_s29, [#allocation3]  }
   0x8   :  { %s274_s1 = smov [#allocation7]  }
   0x9   :  { %s45_s8 = sshll.u32 %s274_s1, 4  ;;  %s46_s8 = int_to_ptr.vmem [resolvable:$true] %s45_s8 }
   0xa   :  { %51 = dma.hbm_to_vmem [thread:$0]  %s44_s7, 1024, %s46_s8, [#allocation6], %s271_s26, %s271_s26, %s272_s27  }
   0xb   :  { %264 = dma.done.wait [#allocation3], 128  }
   0xc   :  { %265 = vsyncadd [#allocation3], 4294967168 }
   0xd   :  { %266 = dma.done.wait [#allocation6], 1536  }
   0xe   :  { %267 = vsyncadd [#allocation6], 4294965760  ;;  %v70_v0 = vld [vmem:[#allocation5 + $0x18] sm:$0xff]  ;;  %v69_v1 = vld [vmem:[#allocation5 + $0x10] sm:$0xff]  ;;  %vm75_vm0 = vcmask 261120   ;;  %vm112_vm1 = vcmask 523264  }
   0xf   :  { %91 = vmatpush.msra.mxu0 %v70_v0  ;;  %v107_v2 = vld [vmem:[#allocation7 + $0x38] sm:$0xff]  ;;  %v68_v3 = vld [vmem:[#allocation5 + $0x8] sm:$0xff]  ;;  %v106_v4 = vld [vmem:[#allocation7 + $0x30] sm:$0xff]  ;;  %s275_s11 = smov [#allocation8]   ;;  %s147_s15 = sshll.u32 %s329_s5, 4  ;;  %vm138_vm2 = vcmask 519168   ;;  %s148_s15 = int_to_ptr.hbm [resolvable:$true] %s147_s15 }
  0x10   :  { %124 = vmatpush.msra.mxu1 %v107_v2  ;;  %v105_v5 = vld [vmem:[#allocation7 + $0x28] sm:$0xff]  ;;  %v67_v6 = vld [vmem:[#allocation5] sm:$0xff]  ;;  %v66_v7 = vld [vmem:[#allocation2] sm:$0xff]  ;;  %s145_s12 = sshll.u32 %s275_s11, 4  ;;  %s146_s12 = int_to_ptr.vmem [resolvable:$true] %s145_s12 }
  0x11   :  { %92 = vmatpush.msra.mxu0 %v69_v1  ;;  %v104_v8 = vld [vmem:[#allocation7 + $0x20] sm:$0xff]  ;;  %v103_v9 = vld [vmem:[#allocation7 + $0x18] sm:$0xff]  ;;  %v102_v10 = vld [vmem:[#allocation7 + $0x10] sm:$0xff] }
  0x12   :  { %125 = vmatpush.msra.mxu1 %v106_v4  ;;  %v101_v11 = vld [vmem:[#allocation7 + $0x8] sm:$0xff]  ;;  %v100_v12 = vld [vmem:[#allocation7] sm:$0xff]  ;;  %v166_v13 = vld [vmem:[%s326_s2] ss:$0 sm:$0xff] }
  0x13   :  { %93 = vmatpush.msra.mxu0 %v68_v3  ;;  %v167_v17 = vld [vmem:[%s328_s4] ss:$0 sm:$0xff] }
  0x14   :  { %126 = vmatpush.msra.mxu1 %v105_v5 }
  0x15   :  { %94 = vmatpush.msra.mxu0 %v67_v6 }
  0x16   :  { %158 = vmatmul.msk.f32.vlgmr.msra.gmra.mxu0 %vm75_vm0, %v66_v7  ;;  %127 = vmatpush.msra.mxu1 %v104_v8 }
  0x18   :  { %128 = vmatpush.msra.mxu1 %v103_v9 }
  0x1a   :  { %129 = vmatpush.msra.mxu1 %v102_v10 }
  0x1c   :  { %130 = vmatpush.msra.mxu1 %v101_v11 }
  0x1e   :  { %131 = vmatpush.msra.mxu1 %v100_v12 }
  0x93   :  { %v96_v14 = vpop.f32.mrf.mxu0 }
  0x94   :  { %v97_v15 = vadd.f32 %v166_v13, %v96_v14 }
  0x96   :  { %v99_v16 = vmax.f32 %v97_v15, 0.0 }
  0x98   :  { %159 = vmatmul.msk.f32.vlgmr.msra.gmra.mxu1 %vm112_vm1, %v99_v16 }
 0x115   :  { %v133_v18 = vpop.f32.mrf.mxu1 }
 0x116   :  { %v134_v19 = vadd.f32 %v167_v17, %v133_v18 }
 0x118   :  { %v136_v20 = vmax.f32 %v134_v19, 0.0 }
 0x11a   :  { %v137_v21 = vpack.c.bf16 %v136_v20, %v136_v20 }
 0x11c   :  { %139 = vst.msk [vmem:[#allocation8] sm:$0xf] %vm138_vm2, %v137_v21 }
 0x11d   :  { %150 = dma.vmem_to_hbm [thread:$0]  %s146_s12, 64, %s148_s15, [#allocation4]  }
 0x11e   :  { %268 = dma.done.wait [#allocation4], 64  }
 0x11f   :  { %269 = vsyncadd [#allocation4], 4294967232 }
 0x120   :  { %155 = vsyncpa [#allocation3], 1 }
 0x121   :  { %156 = vsyncpa [#allocation6], 1 }
 0x122   :  { %157 = vsyncpa [#allocation4], 1 }

</bundles_post_ra>
